<compile_context>
chip_gen: v6e
topology: v6e:2x2x1
jax: 0.10.0
libtpu: 0.0.40
codegen_flags: <defaults>
</compile_context>

<pallas_src>
import functools

import numpy as np

import jax
import jax.numpy as jnp
from jax.experimental import pallas as pl
from jax.experimental.pallas import tpu as pltpu


# ----------------------------------------------------------------------------
# pltpu.roll direction probe (run once at init; makes tap shifts sign-safe)
# ----------------------------------------------------------------------------
def _roll_probe_kernel(x_ref, o_ref):
    o_ref[...] = pltpu.roll(x_ref[...], 1, 1)


def _probe_roll_matches_numpy():
    """True iff pltpu.roll(x, s, axis) == np.roll(x, s, axis) (data moves toward higher lanes)."""
    x = jnp.arange(8 * 128, dtype=jnp.float32).reshape(8, 128)
    y = pl.pallas_call(
        _roll_probe_kernel,
        out_shape=jax.ShapeDtypeStruct((8, 128), jnp.float32),
    )(x)
    return bool(y[0, 0] == x[0, 127])


# ----------------------------------------------------------------------------
# Fused kernel: rgb backbone + depth backbone + voxel head for a block of whole images
# ----------------------------------------------------------------------------
def _fused_voxdepth_kernel(x0_ref, w1_ref, w2_ref, wv_ref, wp_ref, b_ref, scores_ref,
                           *, H, W, roll_fwd):
    S = H * W
    L = x0_ref.shape[1]              # block lane width = (#images in block) * S

    # Per-lane (y, x) inside its own image; blocks hold whole images, so these masks realize
    # conv zero-padding AND stop taps leaking across image seams from the lane-folding.
    lane = jax.lax.broadcasted_iota(jnp.int32, (1, L), 1)
    pix = lane % S
    yy = pix // W
    xx = pix % W
    m_top = (yy >= 1).astype(jnp.float32)        # valid when dy == -1
    m_bot = (yy <= H - 2).astype(jnp.float32)    # valid when dy == +1
    m_lft = (xx >= 1).astype(jnp.float32)        # valid when dx == -1
    m_rgt = (xx <= W - 2).astype(jnp.float32)    # valid when dx == +1

    taps = []
    for dy in (-1, 0, 1):
        for dx in (-1, 0, 1):
            off = dy * W + dx
            m = None
            if dy == -1:
                m = m_top
            elif dy == 1:
                m = m_bot
            if dx == -1:
                m = m_lft if m is None else m * m_lft
            elif dx == 1:
                m = m_rgt if m is None else m * m_rgt
            taps.append((off, m))

    def stacked_taps(x_f32):
        """(Cin, L) f32 -> (9*Cin, L) bf16: 9 rolled + boundary-masked copies, sublane-stacked."""
        pieces = []
        for off, m in taps:
            if off == 0:
                sh = x_f32
            else:
                shift = (-off) % L if roll_fwd else off % L   # want sh[i] = x[i + off]
                sh = pltpu.roll(x_f32, shift, 1)
            pieces.append(sh if m is None else sh * m)
        return jnp.concatenate(pieces, axis=0).astype(jnp.bfloat16)

    b_all = b_ref[...]                    # (80, 1) f32
    b1 = b_all[0:16]
    b2 = b_all[16:32]
    bv = b_all[32:64]
    bp = b_all[64:80]

    x0 = x0_ref[...]                      # (8, L) f32 = [rgb(3), masked depth(1), zero pad(4)]

    # Layer 1: fused rgb-conv1 + depth-conv1 (block-diagonal weights), K = 9*8 = 72
    a1 = jnp.maximum(
        jnp.dot(w1_ref[...], stacked_taps(x0), preferred_element_type=jnp.float32) + b1, 0.0)
    # Layer 2: fused rgb-conv2 + depth-conv2, K = 9*16 = 144
    a2 = jnp.maximum(
        jnp.dot(w2_ref[...], stacked_taps(a1), preferred_element_type=jnp.float32) + b2, 0.0)
    # VoxelHead conv3x3 over the rgbd concat (channel order is already [rgb(8), depth(8)])
    hv = jnp.maximum(
        jnp.dot(wv_ref[...], stacked_taps(a2), preferred_element_type=jnp.float32) + bv, 0.0)
    # 1x1 predictor (no ReLU); lane-dense (D, L) store
    scores_ref[...] = jnp.dot(wp_ref[...], hv.astype(jnp.bfloat16),
                              preferred_element_type=jnp.float32) + bp


def _const_spec(arr):
    """Whole-array VMEM block with a constant block index (weights loaded once)."""
    zeros = (0,) * arr.ndim
    return pl.BlockSpec(arr.shape, lambda i, _z=zeros: _z)


def _fused_forward(imgs, masked_depths, w1, w2, wv, wp, biases, *, roll_fwd):
    """imgs (B,V,3,H,W), masked_depths (B,V,H,W) -> per-view voxel scores (B,V,D,H,W)."""
    B, V, _, H, W = imgs.shape
    BV, S = B * V, H * W
    L_total = BV * S
    D = wp.shape[0]

    # Channel-major with BV folded into lanes: (C, BV*S). Pure layout plumbing, done by XLA.
    imgs_cm = imgs.astype(jnp.float32).reshape(BV, 3, S).transpose(1, 0, 2).reshape(3, L_total)
    mdep_cm = masked_depths.astype(jnp.float32).reshape(1, L_total)
    x0 = jnp.concatenate(
        [imgs_cm, mdep_cm, jnp.zeros((4, L_total), jnp.float32)], axis=0)      # (8, L_total)

    # grid=(2,) keeps both v7x TensorCores busy; fall back to 1 block if lanes would misalign.
    n_blk = 2 if (BV % 2 == 0 and ((BV // 2) * S) % 128 == 0) else 1
    L_blk = L_total // n_blk

    kern = functools.partial(_fused_voxdepth_kernel, H=H, W=W, roll_fwd=roll_fwd)
    scores = pl.pallas_call(
        kern,
        grid=(n_blk,),
        in_specs=[pl.BlockSpec((8, L_blk), lambda i: (0, i)),
                  _const_spec(w1), _const_spec(w2), _const_spec(wv), _const_spec(wp),
                  _const_spec(biases)],
        out_specs=pl.BlockSpec((D, L_blk), lambda i: (0, i)),
        out_shape=jax.ShapeDtypeStruct((D, L_total), jnp.float32),
        compiler_params=pltpu.CompilerParams(dimension_semantics=("parallel",)),
    )(x0, w1, w2, wv, wp, biases)

    # (D, BV*S) -> (B, V, D, H, W)
    return scores.reshape(D, BV, H, W).transpose(1, 0, 2, 3).reshape(B, V, D, H, W)


# ----------------------------------------------------------------------------
# Pure-JAX f32 reference (for the numerics self-check in __main__)
# ----------------------------------------------------------------------------
def _reference_voxel_scores(imgs, masked_depths, raw):
    B, V, _, H, W = imgs.shape
    BV = B * V
    hp = jax.lax.Precision.HIGHEST
    x = imgs.reshape(BV, 3, H, W).astype(jnp.float32)
    md = masked_depths.reshape(BV, 1, H, W).astype(jnp.float32)

    def conv(z, wk, bk, relu=True):
        y = jax.lax.conv_general_dilated(
            z, jnp.asarray(wk), (1, 1), "SAME",
            dimension_numbers=("NCHW", "HWIO", "NCHW"), precision=hp)
        y = y + jnp.asarray(bk).reshape(1, -1, 1, 1)
        return jnp.maximum(y, 0.0) if relu else y

    f = conv(conv(x, raw["rgb_w1"], raw["rgb_b1"]), raw["rgb_w2"], raw["rgb_b2"])
    d = conv(conv(md, raw["dep_w1"], raw["dep_b1"]), raw["dep_w2"], raw["dep_b2"])
    hv = conv(jnp.concatenate([f, d], axis=1), raw["vox_w1"], raw["vox_b1"])
    scores = jnp.einsum("nchw,cd->ndhw", hv, jnp.asarray(raw["vox_wp"]), precision=hp)
    scores = scores + jnp.asarray(raw["vox_bp"]).reshape(1, -1, 1, 1)
    return scores.reshape(B, V, -1, H, W)


# ----------------------------------------------------------------------------
# VoxDepthHead (forward == forward_voxel_head), GT-depth / single-view configuration
# ----------------------------------------------------------------------------
class VoxDepthHeadPallas:
    def __init__(self, key, rgb_dims=(8, 8), depth_dims=(8, 8), voxel_hidden=32, voxel_size=16):
        assert rgb_dims == (8, 8) and depth_dims == (8, 8) and voxel_hidden == 32
        self.voxel_size = voxel_size
        self.roll_fwd = _probe_roll_matches_numpy()

        ks = jax.random.split(key, 12)

        def w(k, shape, scale=0.1):
            return np.asarray(scale * jax.random.normal(k, shape, dtype=jnp.float32))

        # Raw params in HWIO (kh, kw, Cin, Cout) layout (as a converted PyTorch ckpt would be).
        raw = dict(
            rgb_w1=w(ks[0], (3, 3, 3, 8)), rgb_b1=w(ks[1], (8,)),
            rgb_w2=w(ks[2], (3, 3, 8, 8)), rgb_b2=w(ks[3], (8,)),
            dep_w1=w(ks[4], (3, 3, 1, 8)), dep_b1=w(ks[5], (8,)),
            dep_w2=w(ks[6], (3, 3, 8, 8)), dep_b2=w(ks[7], (8,)),
            vox_w1=w(ks[8], (3, 3, 16, 32)), vox_b1=w(ks[9], (32,)),
            vox_wp=w(ks[10], (32, voxel_size)), vox_bp=w(ks[11], (voxel_size,)),
        )
        self.raw = raw

        # ---- pack tap-stacked / block-diagonal matmul weights ------------------------------
        C1 = 8                                   # layer-1 packed input: [rgb(3), depth(1), pad(4)]
        W1 = np.zeros((16, 9 * C1), np.float32)  # rows 0-7 rgb-conv1, rows 8-15 depth-conv1
        W2 = np.zeros((16, 9 * 16), np.float32)  # rows 0-7 rgb-conv2, rows 8-15 depth-conv2
        WV = np.zeros((32, 9 * 16), np.float32)  # voxel 3x3 conv over [rgb(8), depth(8)] feats
        for t in range(9):
            kh, kw = divmod(t, 3)
            W1[0:8,  t * C1 + 0: t * C1 + 3] = raw["rgb_w1"][kh, kw].T
            W1[8:16, t * C1 + 3] = raw["dep_w1"][kh, kw, 0]
            W2[0:8,  t * 16 + 0: t * 16 + 8] = raw["rgb_w2"][kh, kw].T
            W2[8:16, t * 16 + 8: t * 16 + 16] = raw["dep_w2"][kh, kw].T
            WV[:,    t * 16 + 0: t * 16 + 16] = raw["vox_w1"][kh, kw].T
        WP = raw["vox_wp"].T                     # (D, 32)
        BIAS = np.concatenate([raw["rgb_b1"], raw["dep_b1"], raw["rgb_b2"], raw["dep_b2"],
                               raw["vox_b1"], raw["vox_bp"]]).reshape(-1, 1)     # (80, 1)

        self.params = dict(
            w1=jnp.asarray(W1, jnp.bfloat16),
            w2=jnp.asarray(W2, jnp.bfloat16),
            wv=jnp.asarray(WV, jnp.bfloat16),
            wp=jnp.asarray(WP, jnp.bfloat16),
            biases=jnp.asarray(BIAS, jnp.float32),
        )
        self._forward = jax.jit(functools.partial(_fused_forward, roll_fwd=self.roll_fwd))

    def __call__(self, imgs, intrinsics, extrinsics, masks, voxel_only=False, depths=None):
        """
        imgs (B,V,3,H,W); intrinsics/extrinsics (B,V,4,4) (unused on the GT-depth single-view
        path); masks (B,V,H,W); depths (B,V,H,W) GT depth (USE_GT_DEPTH=True).
        """
        del intrinsics, extrinsics, voxel_only
        B, V = imgs.shape[:2]
        H, W = imgs.shape[-2:]

        # predict_depths (GT path): resizes are identity (MVSNET size == input size);
        # depth*mask is trivial elementwise, left to XLA per perf review.
        pred_depths = depths
        masked_pred_depths = (depths * masks).astype(jnp.float32)

        p = self.params
        voxel_scores = self._forward(imgs, masked_pred_depths,
                                     p["w1"], p["w2"], p["wv"], p["wp"], p["biases"])

        # ---- get_merged_voxel_scores (SINGLE_VIEW=True branch)
        merged_voxel_scores = voxel_scores[:, 0]
        transformed_voxel_scores = merged_voxel_scores
        voxel_scores_list = [voxel_scores[:, 0]]
        # TODO(synk): MVSNet cost-volume depth prediction and multi-view voxel merging /
        #             cubify have no Pallas port; only USE_GT_DEPTH + SINGLE_VIEW is covered.

        return {
            "voxel_scores": voxel_scores_list,
            "merged_voxel_scores": merged_voxel_scores,
            "transformed_voxel_scores": transformed_voxel_scores,
            "pred_depths": pred_depths,
            "masked_pred_depths": masked_pred_depths,
        }


if __name__ == "__main__":
    key = jax.random.PRNGKey(0)
    k_model, k_img, k_mask, k_depth = jax.random.split(key, 4)

    B, V, H, W = 2, 2, 16, 16
    imgs = jax.random.normal(k_img, (B, V, 3, H, W), dtype=jnp.float32)
    intrinsics = jnp.tile(jnp.eye(4, dtype=jnp.float32), (B, V, 1, 1))
    extrinsics = jnp.tile(jnp.eye(4, dtype=jnp.float32), (B, V, 1, 1))
    masks = (jax.random.uniform(k_mask, (B, V, H, W)) > 0.5).astype(jnp.float32)
    depths = jax.random.uniform(k_depth, (B, V, H, W), dtype=jnp.float32) * 2.0

    model = VoxDepthHeadPallas(k_model)
    out = model(imgs, intrinsics, extrinsics, masks, depths=depths)
    jax.block_until_ready(out)

    D = model.voxel_size
    assert out["merged_voxel_scores"].shape == (B, D, H, W)
    assert out["voxel_scores"][0].shape == (B, D, H, W)
    assert out["masked_pred_depths"].shape == (B, V, H, W)
    assert out["pred_depths"].shape == (B, V, H, W)

    # Numerics: fused bf16-MXU Pallas kernel vs a pure-JAX f32 reference of the same forward.
    p = model.params
    got = model._forward(imgs, depths * masks, p["w1"], p["w2"], p["wv"], p["wp"], p["biases"])
    ref = _reference_voxel_scores(imgs, depths * masks, model.raw)
    np.testing.assert_allclose(np.asarray(got), np.asarray(ref), rtol=0.05, atol=0.05)

    print("KERNEL_OK")
</pallas_src>

<mosaic_0001>
module attributes {stable_mosaic.version = 11 : i64} {
  func.func @_roll_probe_kernel(%arg0: memref<8x128xf32, #tpu.memory_space<vmem>>, %arg1: memref<8x128xf32, #tpu.memory_space<vmem>>) attributes {dimension_semantics = [], scalar_prefetch = 0 : i64, scratch_operands = 0 : i64, tpu.core_type = #tpu.core_type<tc>} {
    %c0 = arith.constant 0 : index
    %c0_0 = arith.constant 0 : index
    %0 = vector.load %arg0[%c0, %c0_0] : memref<8x128xf32, #tpu.memory_space<vmem>>, vector<8x128xf32>
    %c1_i32 = arith.constant 1 : i32
    %1 = tpu.dynamic_rotate %0 by %c1_i32 dim 1 : vector<8x128xf32>, i32 -> vector<8x128xf32>
    %c0_1 = arith.constant 0 : index
    %c0_2 = arith.constant 0 : index
    %2 = vector.load %arg1[%c0_1, %c0_2] : memref<8x128xf32, #tpu.memory_space<vmem>>, vector<8x128xf32>
    tpu.vector_store %arg1[%c0_1, %c0_2], %1 {strides = array<i32>} : memref<8x128xf32, #tpu.memory_space<vmem>>, vector<8x128xf32>,
    return
  }
}

</mosaic_0001>

<bundles_post_ra>
// kernel: tpu_custom_call.1
= control target key start
LH: loop header
LB: loop body
LE: loop exit
PB: predicated region body
PF: predicated region fallthrough
CT: control target
= control target key end

     0   :  { %6 = vsyncpa [#allocation3], 0  ;;  %s106_s0 = inlined_call_operand.hbm [shape: f32[8,128], index: 0, kind: input, shape index: {}]   ;;  %s107_s1 = inlined_call_operand.hbm [shape: f32[8,128], index: 1, kind: output, shape index: {}]  }
   0x1   :  { %7 = vsyncpa [#allocation4], 0  ;;  %s87_s6 = smov [#allocation2]  }
   0x2   :  { %s14_s7 = sshll.u32 %s87_s6, 4  ;;  %s15_s7 = int_to_ptr.vmem [resolvable:$true] %s14_s7 }
   0x3   :  { %s51_s8 = scalar_lea.vmem %s15_s7, 128  ;;  %p56_p1 = scmp.lt.s32.totalorder %s15_s7, %s15_s7 }
   0x4   :  { %p52_p0 = scmp.ne.s32.totalorder %s15_s7, %s51_s8  ;;  %p57_p2 = scmp.lt.s32.totalorder %s51_s8, %s51_s8 }
   0x6   :  { %p58_p3 = por %p57_p2, %p56_p1 }
   0x8   :  { %p59_p4 = pnand %p58_p3, %p52_p0 }
   0xa   :  { %62 = shalt.err (!%p59_p4)
}
   0xb   :  { %17 = dma.hbm_to_vmem [thread:$0]  %s106_s0, 128, %s15_s7, [#allocation3]  }
   0xc   :  { %83 = dma.done.wait [#allocation3], 128  }
   0xd   :  { %84 = vsyncadd [#allocation3], 4294967168  ;;  %v21_v0 = vld [vmem:[#allocation2] sm:$0xff]  ;;  %s88_s11 = smov 1   ;;  %s89_s12 = smov [#allocation5]  }
   0xe   :  { %22 = vrot.lane.b32.xlu0 %v21_v0, %s88_s11  ;;  %s31_s13 = sshll.u32 %s89_s12, 4  ;;  %s32_s13 = int_to_ptr.vmem [resolvable:$true] %s31_s13 }
   0xf   :  { %s63_s14 = scalar_lea.vmem %s32_s13, 128  ;;  %p68_p6 = scmp.lt.s32.totalorder %s32_s13, %s32_s13 }
  0x10   :  { %p64_p5 = scmp.ne.s32.totalorder %s32_s13, %s63_s14  ;;  %p69_p7 = scmp.lt.s32.totalorder %s63_s14, %s63_s14 }
  0x12   :  { %p70_p8 = por %p69_p7, %p68_p6 }
  0x14   :  { %p71_p9 = pnand %p70_p8, %p64_p5 }
  0x80   :  { %v23_v1 = vpop.permute.xlu0 %22 }
  0x81   :  { %24 = vst [vmem:[#allocation5] sm:$0xff] %v23_v1 }
  0x82   :  { %74 = shalt.err (!%p71_p9)
}
  0x83   :  { %34 = dma.vmem_to_hbm [thread:$0]  %s32_s13, 128, %s107_s1, [#allocation4]  }
  0x84   :  { %85 = dma.done.wait [#allocation4], 128  }
  0x85   :  { %86 = vsyncadd [#allocation4], 4294967168 }
  0x86   :  { %38 = vsyncpa [#allocation3], 1 }
  0x87   :  { %39 = vsyncpa [#allocation4], 1 }

</bundles_post_ra>
